<compile_context>
chip_gen: v7x
topology: tpu7x:2x2x1
jax: 0.10.0
libtpu: 0.0.40
codegen_flags: <defaults>
</compile_context>

<pallas_src>
import jax
import jax.numpy as jnp
from jax.experimental import pallas as pl
from jax.experimental.pallas import tpu as pltpu


def _round_up(x, m):
    return (x + m - 1) // m * m


def linear_model_kernel(emb1_ref, emb2_ref, len1_ref, len2_ref,
                        w1_ref, b1_ref, w2_ref, b2_ref,
                        logit_ref, prob_ref):
    # --- mean pooling over the sequence axis; upcast AFTER the DMA so a bf16
    #     embedding table would halve HBM->VMEM bytes for free ---
    s1 = jnp.sum(emb1_ref[...].astype(jnp.float32), axis=1)           # (Bt, E)
    s2 = jnp.sum(emb2_ref[...].astype(jnp.float32), axis=1)           # (Bt, E)
    e1 = s1 * pl.reciprocal(len1_ref[...], approx=False)              # (Bt, E)
    e2 = s2 * pl.reciprocal(len2_ref[...], approx=False)

    # feature = concat([e1, e2, |e1-e2|, e1*e2]) -> (Bt, 4E): one lane-dense
    # K=4E MXU push instead of four K=E dots plus three merge adds.
    feat = jnp.concatenate([e1, e2, jnp.abs(e1 - e2), e1 * e2], axis=-1)

    # TODO(synk): nn.Dropout layers are identity at inference; not modeled.
    h = jnp.dot(feat, w1_ref[...], preferred_element_type=jnp.float32) + b1_ref[...]
    h = jnp.maximum(h, 0.0)                                            # ReLU

    # classes are padded to 128 lanes; padded bias columns hold -1e30 so they
    # contribute exp(..)=0 to the softmax and stores stay full-lane writes.
    logit = jnp.dot(h, w2_ref[...], preferred_element_type=jnp.float32) + b2_ref[...]
    logit_ref[...] = logit

    m = jnp.max(logit, axis=-1, keepdims=True)
    ex = jnp.exp(logit - m)
    denom = jnp.sum(ex, axis=-1, keepdims=True)
    prob_ref[...] = ex * pl.reciprocal(denom, approx=True)


def linear_model_forward(emb_table, text1, len1, text2, len2, w1, b1, w2, b2,
                         *, batch_tile=8):
    """LinearModel forward. Returns (logit, prob), each (B, num_classes) f32."""
    B = text1.shape[0]
    E = emb_table.shape[1]
    H = w1.shape[1]
    C = w2.shape[1]

    # glue: embedding gather in plain JAX, kept in the table's native dtype.
    emb1 = emb_table[text1]                                            # (B, L1, E)
    emb2 = emb_table[text2]                                            # (B, L2, E)
    L1, L2 = emb1.shape[1], emb2.shape[1]

    # --- padding for lane/sublane-dense layout ---
    batch_tile = _round_up(batch_tile, 8)        # sublane-aligned batch tile
    Bp = _round_up(max(B, 1), batch_tile)
    Cp = _round_up(C, 128)                       # lane-dense outputs
    pb = Bp - B

    emb1 = jnp.pad(emb1, ((0, pb), (0, 0), (0, 0)))
    emb2 = jnp.pad(emb2, ((0, pb), (0, 0), (0, 0)))
    # padded rows get length 1.0 so they never divide by zero (rows are sliced off).
    len1_ = jnp.pad(len1.reshape(B, 1).astype(jnp.float32), ((0, pb), (0, 0)),
                    constant_values=1.0)
    len2_ = jnp.pad(len2.reshape(B, 1).astype(jnp.float32), ((0, pb), (0, 0)),
                    constant_values=1.0)

    w1p = w1.astype(jnp.float32)                                       # (4E, H)
    b1p = b1.reshape(1, H).astype(jnp.float32)                         # (1, H)
    w2p = jnp.pad(w2.astype(jnp.float32), ((0, 0), (0, Cp - C)))       # (H, Cp)
    b2p = jnp.full((1, Cp), -1e30, jnp.float32).at[0, :C].set(b2.astype(jnp.float32))

    grid = (Bp // batch_tile,)

    # VMEM budget: double-buffered input/output tiles + resident weights.
    # Sized against v7x's 64 MiB/TC ceiling; choose batch_tile so this fits.
    ebytes = emb1.dtype.itemsize
    tile_in = batch_tile * (L1 + L2) * E * ebytes + 2 * batch_tile * 4
    tile_out = 2 * batch_tile * Cp * 4
    weight_bytes = 4 * (w1p.size + b1p.size + w2p.size + b2p.size)
    vmem_limit = int(min(max(2 * (tile_in + tile_out) + weight_bytes + (2 << 20),
                             8 << 20), 64 << 20))

    cost = pl.CostEstimate(
        flops=int(2 * Bp * (4 * E * H + H * Cp) + Bp * (L1 + L2) * E),
        transcendentals=int(Bp * (Cp + 3)),
        bytes_accessed=int(Bp * (L1 + L2) * E * ebytes + weight_bytes
                           + 2 * Bp * Cp * 4 + 2 * Bp * 4),
    )

    logit_p, prob_p = pl.pallas_call(
        linear_model_kernel,
        out_shape=(jax.ShapeDtypeStruct((Bp, Cp), jnp.float32),
                   jax.ShapeDtypeStruct((Bp, Cp), jnp.float32)),
        grid_spec=pltpu.PrefetchScalarGridSpec(
            num_scalar_prefetch=0,
            grid=grid,
            in_specs=[
                pl.BlockSpec((batch_tile, L1, E), lambda i: (i, 0, 0)),   # emb1
                pl.BlockSpec((batch_tile, L2, E), lambda i: (i, 0, 0)),   # emb2
                pl.BlockSpec((batch_tile, 1), lambda i: (i, 0)),          # len1
                pl.BlockSpec((batch_tile, 1), lambda i: (i, 0)),          # len2
                pl.BlockSpec((4 * E, H), lambda i: (0, 0)),               # w1 (resident)
                pl.BlockSpec((1, H), lambda i: (0, 0)),                   # b1 (resident)
                pl.BlockSpec((H, Cp), lambda i: (0, 0)),                  # w2 (resident)
                pl.BlockSpec((1, Cp), lambda i: (0, 0)),                  # b2 (resident)
            ],
            out_specs=(
                pl.BlockSpec((batch_tile, Cp), lambda i: (i, 0)),         # logit
                pl.BlockSpec((batch_tile, Cp), lambda i: (i, 0)),         # prob
            ),
        ),
        compiler_params=pltpu.CompilerParams(
            dimension_semantics=("parallel",),   # v7x: shard batch grid over 2 TCs
            vmem_limit_bytes=vmem_limit,
        ),
        cost_estimate=cost,
    )(emb1, emb2, len1_, len2_, w1p, b1p, w2p, b2p)

    return logit_p[:B, :C], prob_p[:B, :C]


def xavier_uniform(key, fan_in, fan_out):
    bound = (6.0 / (fan_in + fan_out)) ** 0.5
    return jax.random.uniform(key, (fan_in, fan_out), jnp.float32,
                              minval=-bound, maxval=bound)


if __name__ == "__main__":
    # small, deterministic config
    vocab_size, embed_dim, hidden_dim, num_classes = 64, 32, 32, 2
    padding_idx = 1
    B, L = 2, 8

    root = jax.random.PRNGKey(0)
    k_emb, k_w1, k_w2, k_t1, k_t2 = jax.random.split(root, 5)

    # nn.Embedding default init: N(0, 1); padding row zeroed.
    emb_table = jax.random.normal(k_emb, (vocab_size, embed_dim), jnp.float32)
    emb_table = emb_table.at[padding_idx].set(0.0)

    # nn.Linear weights: xavier_uniform, biases: 0  (stored as (in, out))
    w1 = xavier_uniform(k_w1, 4 * embed_dim, hidden_dim)
    b1 = jnp.zeros((hidden_dim,), jnp.float32)
    w2 = xavier_uniform(k_w2, hidden_dim, num_classes)
    b2 = jnp.zeros((num_classes,), jnp.float32)

    text1 = jax.random.randint(k_t1, (B, L), 0, vocab_size, dtype=jnp.int32)
    text2 = jax.random.randint(k_t2, (B, L), 0, vocab_size, dtype=jnp.int32)
    len1 = jnp.array([L, L - 2], jnp.float32)
    len2 = jnp.array([L - 1, L], jnp.float32)

    logit, prob = linear_model_forward(emb_table, text1, len1, text2, len2,
                                       w1, b1, w2, b2)
    jax.block_until_ready((logit, prob))

    # pure-JAX reference check
    def pool(text, ln):
        return jnp.sum(emb_table[text].astype(jnp.float32), axis=1) / ln.reshape(B, 1)

    e1, e2 = pool(text1, len1), pool(text2, len2)
    feat = jnp.concatenate([e1, e2, jnp.abs(e1 - e2), e1 * e2], axis=1)
    h = jnp.maximum(feat @ w1 + b1, 0.0)
    logit_ref = h @ w2 + b2
    prob_ref = jax.nn.softmax(logit_ref, axis=1)

    assert logit.shape == (B, num_classes) and prob.shape == (B, num_classes)
    assert jnp.allclose(logit, logit_ref, atol=1e-4), "logit mismatch"
    # prob path uses the approx EUP reciprocal for the softmax denominator.
    assert jnp.allclose(prob, prob_ref, atol=1e-3), "prob mismatch"

    print("KERNEL_OK")
</pallas_src>

<mosaic_0001>
module attributes {stable_mosaic.version = 11 : i64} {
  func.func @linear_model_kernel(%arg0: i32, %arg1: memref<8x8x32xf32, #tpu.memory_space<vmem>>, %arg2: memref<8x8x32xf32, #tpu.memory_space<vmem>>, %arg3: memref<8x1xf32, #tpu.memory_space<vmem>>, %arg4: memref<8x1xf32, #tpu.memory_space<vmem>>, %arg5: memref<128x32xf32, #tpu.memory_space<vmem>>, %arg6: memref<1x32xf32, #tpu.memory_space<vmem>>, %arg7: memref<32x128xf32, #tpu.memory_space<vmem>>, %arg8: memref<1x128xf32, #tpu.memory_space<vmem>>, %arg9: memref<8x128xf32, #tpu.memory_space<vmem>>, %arg10: memref<8x128xf32, #tpu.memory_space<vmem>>) attributes {dimension_semantics = [#tpu.dimension_semantics<parallel>], iteration_bounds = array<i64: 1>, scalar_prefetch = 0 : i64, scratch_operands = 0 : i64, tpu.core_type = #tpu.core_type<tc>, window_params = [{transform_indices = @transform_0, window_bounds = array<i64: 8, 8, 32>}, {transform_indices = @transform_1, window_bounds = array<i64: 8, 8, 32>}, {transform_indices = @transform_2, window_bounds = array<i64: 8, 1>}, {transform_indices = @transform_3, window_bounds = array<i64: 8, 1>}, {pipeline_mode = #tpu.pipeline_mode<synchronous>, transform_indices = @transform_4, window_bounds = array<i64: 128, 32>}, {pipeline_mode = #tpu.pipeline_mode<synchronous>, transform_indices = @transform_5, window_bounds = array<i64: 1, 32>}, {pipeline_mode = #tpu.pipeline_mode<synchronous>, transform_indices = @transform_6, window_bounds = array<i64: 32, 128>}, {pipeline_mode = #tpu.pipeline_mode<synchronous>, transform_indices = @transform_7, window_bounds = array<i64: 1, 128>}, {transform_indices = @transform_8, window_bounds = array<i64: 8, 128>}, {transform_indices = @transform_9, window_bounds = array<i64: 8, 128>}]} {
    %c0 = arith.constant 0 : index
    %c0_0 = arith.constant 0 : index
    %c0_1 = arith.constant 0 : index
    %0 = vector.load %arg1[%c0, %c0_0, %c0_1] : memref<8x8x32xf32, #tpu.memory_space<vmem>>, vector<8x8x32xf32>
    %cst = arith.constant dense<0.000000e+00> : vector<8x32xf32>
    %1 = vector.multi_reduction <add>, %0, %cst [1] : vector<8x8x32xf32> to vector<8x32xf32>
    %c0_2 = arith.constant 0 : index
    %c0_3 = arith.constant 0 : index
    %c0_4 = arith.constant 0 : index
    %2 = vector.load %arg2[%c0_2, %c0_3, %c0_4] : memref<8x8x32xf32, #tpu.memory_space<vmem>>, vector<8x8x32xf32>
    %cst_5 = arith.constant dense<0.000000e+00> : vector<8x32xf32>
    %3 = vector.multi_reduction <add>, %2, %cst_5 [1] : vector<8x8x32xf32> to vector<8x32xf32>
    %c0_6 = arith.constant 0 : index
    %c0_7 = arith.constant 0 : index
    %4 = vector.load %arg3[%c0_6, %c0_7] : memref<8x1xf32, #tpu.memory_space<vmem>>, vector<8x1xf32>
    %5 = tpu.reciprocal %4 : vector<8x1xf32> -> vector<8x1xf32>
    %6 = vector.broadcast %5 : vector<8x1xf32> to vector<8x32xf32>
    %7 = arith.mulf %1, %6 : vector<8x32xf32>
    %c0_8 = arith.constant 0 : index
    %c0_9 = arith.constant 0 : index
    %8 = vector.load %arg4[%c0_8, %c0_9] : memref<8x1xf32, #tpu.memory_space<vmem>>, vector<8x1xf32>
    %9 = tpu.reciprocal %8 : vector<8x1xf32> -> vector<8x1xf32>
    %10 = vector.broadcast %9 : vector<8x1xf32> to vector<8x32xf32>
    %11 = arith.mulf %3, %10 : vector<8x32xf32>
    %12 = arith.subf %7, %11 : vector<8x32xf32>
    %13 = math.absf %12 : vector<8x32xf32>
    %14 = arith.mulf %7, %11 : vector<8x32xf32>
    %15 = tpu.concatenate %7, %11, %13, %14 in 1 : vector<8x32xf32>, vector<8x32xf32>, vector<8x32xf32>, vector<8x32xf32> -> vector<8x128xf32>
    %c0_10 = arith.constant 0 : index
    %c0_11 = arith.constant 0 : index
    %16 = vector.load %arg5[%c0_10, %c0_11] : memref<128x32xf32, #tpu.memory_space<vmem>>, vector<128x32xf32>
    %cst_12 = arith.constant dense<0.000000e+00> : vector<8x32xf32>
    %17 = tpu.matmul %15, %16, %cst_12 {dimension_numbers = #tpu.dot_dimension_numbers<[1], [0], [0], [1], [0, 0, 1, 1], [], []>} : vector<8x128xf32>, vector<128x32xf32>, vector<8x32xf32> -> vector<8x32xf32>
    %c0_13 = arith.constant 0 : index
    %c0_14 = arith.constant 0 : index
    %18 = vector.load %arg6[%c0_13, %c0_14] : memref<1x32xf32, #tpu.memory_space<vmem>>, vector<1x32xf32>
    %19 = vector.broadcast %18 : vector<1x32xf32> to vector<8x32xf32>
    %20 = arith.addf %17, %19 : vector<8x32xf32>
    %cst_15 = arith.constant 0.000000e+00 : f32
    %21 = vector.broadcast %cst_15 : f32 to vector<8x32xf32>
    %22 = arith.maximumf %20, %21 : vector<8x32xf32>
    %c0_16 = arith.constant 0 : index
    %c0_17 = arith.constant 0 : index
    %23 = vector.load %arg7[%c0_16, %c0_17] : memref<32x128xf32, #tpu.memory_space<vmem>>, vector<32x128xf32>
    %cst_18 = arith.constant dense<0.000000e+00> : vector<8x128xf32>
    %24 = tpu.matmul %22, %23, %cst_18 {dimension_numbers = #tpu.dot_dimension_numbers<[1], [0], [0], [1], [0, 0, 1, 1], [], []>} : vector<8x32xf32>, vector<32x128xf32>, vector<8x128xf32> -> vector<8x128xf32>
    %c0_19 = arith.constant 0 : index
    %c0_20 = arith.constant 0 : index
    %25 = vector.load %arg8[%c0_19, %c0_20] : memref<1x128xf32, #tpu.memory_space<vmem>>, vector<1x128xf32>
    %26 = vector.broadcast %25 : vector<1x128xf32> to vector<8x128xf32>
    %27 = arith.addf %24, %26 : vector<8x128xf32>
    %c0_21 = arith.constant 0 : index
    %c0_22 = arith.constant 0 : index
    %28 = vector.load %arg9[%c0_21, %c0_22] : memref<8x128xf32, #tpu.memory_space<vmem>>, vector<8x128xf32>
    tpu.vector_store %arg9[%c0_21, %c0_22], %27 {strides = array<i32>} : memref<8x128xf32, #tpu.memory_space<vmem>>, vector<8x128xf32>,
    %cst_23 = arith.constant dense<0xFF800000> : vector<8xf32>
    %29 = vector.multi_reduction <maximumf>, %27, %cst_23 [1] : vector<8x128xf32> to vector<8xf32>
    %30 = vector.shape_cast %29 : vector<8xf32> to vector<8x1xf32>
    %31 = vector.broadcast %30 : vector<8x1xf32> to vector<8x128xf32>
    %32 = arith.subf %27, %31 : vector<8x128xf32>
    %33 = math.exp %32 : vector<8x128xf32>
    %cst_24 = arith.constant dense<0.000000e+00> : vector<8xf32>
    %34 = vector.multi_reduction <add>, %33, %cst_24 [1] : vector<8x128xf32> to vector<8xf32>
    %35 = vector.shape_cast %34 : vector<8xf32> to vector<8x1xf32>
    %36 = tpu.reciprocal %35 {approx = true} : vector<8x1xf32> -> vector<8x1xf32>
    %37 = vector.broadcast %36 : vector<8x1xf32> to vector<8x128xf32>
    %38 = arith.mulf %33, %37 : vector<8x128xf32>
    %c0_25 = arith.constant 0 : index
    %c0_26 = arith.constant 0 : index
    %39 = vector.load %arg10[%c0_25, %c0_26] : memref<8x128xf32, #tpu.memory_space<vmem>>, vector<8x128xf32>
    tpu.vector_store %arg10[%c0_25, %c0_26], %38 {strides = array<i32>} : memref<8x128xf32, #tpu.memory_space<vmem>>, vector<8x128xf32>,
    return
  }
  func.func @transform_0(%arg0: i32) -> (i32, i32, i32) {
    %c0_i32 = arith.constant 0 : i32
    %c0_i32_0 = arith.constant 0 : i32
    %c0_i32_1 = arith.constant 0 : i32
    return %arg0, %c0_i32, %c0_i32_0 : i32, i32, i32
  }
  func.func @transform_1(%arg0: i32) -> (i32, i32, i32) {
    %c0_i32 = arith.constant 0 : i32
    %c0_i32_0 = arith.constant 0 : i32
    %c0_i32_1 = arith.constant 0 : i32
    return %arg0, %c0_i32, %c0_i32_0 : i32, i32, i32
  }
  func.func @transform_2(%arg0: i32) -> (i32, i32) {
    %c0_i32 = arith.constant 0 : i32
    %c0_i32_0 = arith.constant 0 : i32
    return %arg0, %c0_i32 : i32, i32
  }
  func.func @transform_3(%arg0: i32) -> (i32, i32) {
    %c0_i32 = arith.constant 0 : i32
    %c0_i32_0 = arith.constant 0 : i32
    return %arg0, %c0_i32 : i32, i32
  }
  func.func @transform_4(%arg0: i32) -> (i32, i32) {
    %c0_i32 = arith.constant 0 : i32
    %c0_i32_0 = arith.constant 0 : i32
    %c0_i32_1 = arith.constant 0 : i32
    return %c0_i32, %c0_i32_0 : i32, i32
  }
  func.func @transform_5(%arg0: i32) -> (i32, i32) {
    %c0_i32 = arith.constant 0 : i32
    %c0_i32_0 = arith.constant 0 : i32
    %c0_i32_1 = arith.constant 0 : i32
    return %c0_i32, %c0_i32_0 : i32, i32
  }
  func.func @transform_6(%arg0: i32) -> (i32, i32) {
    %c0_i32 = arith.constant 0 : i32
    %c0_i32_0 = arith.constant 0 : i32
    %c0_i32_1 = arith.constant 0 : i32
    return %c0_i32, %c0_i32_0 : i32, i32
  }
  func.func @transform_7(%arg0: i32) -> (i32, i32) {
    %c0_i32 = arith.constant 0 : i32
    %c0_i32_0 = arith.constant 0 : i32
    %c0_i32_1 = arith.constant 0 : i32
    return %c0_i32, %c0_i32_0 : i32, i32
  }
  func.func @transform_8(%arg0: i32) -> (i32, i32) {
    %c0_i32 = arith.constant 0 : i32
    %c0_i32_0 = arith.constant 0 : i32
    return %arg0, %c0_i32 : i32, i32
  }
  func.func @transform_9(%arg0: i32) -> (i32, i32) {
    %c0_i32 = arith.constant 0 : i32
    %c0_i32_0 = arith.constant 0 : i32
    return %arg0, %c0_i32 : i32, i32
  }
}

</mosaic_0001>

<bundles_post_ra>
// kernel: tpu_custom_call.1
= control target key start
LH: loop header
LB: loop body
LE: loop exit
PB: predicated region body
PF: predicated region fallthrough
CT: control target
= control target key end

     0   :  { %15 = vsyncpa [#allocation3], 0  ;;  %v738_v2 = vmov 0   ;;  %s1037_s0 = inlined_call_operand.vmem [shape: f32[8,8,32], index: 0, kind: input, shape index: {}]   ;;  %s1038_s1 = inlined_call_operand.vmem [shape: f32[8,8,32], index: 1, kind: input, shape index: {}]   ;;  %s1039_s2 = inlined_call_operand.vmem [shape: f32[8,1], index: 2, kind: input, shape index: {}]   ;;  %s1040_s3 = inlined_call_operand.vmem [shape: f32[8,1], index: 3, kind: input, shape index: {}]   ;;  %s1041_s4 = inlined_call_operand.vmem [shape: f32[128,32], index: 4, kind: input, shape index: {}]   ;;  %s1042_s5 = inlined_call_operand.vmem [shape: f32[1,32], index: 5, kind: input, shape index: {}]   ;;  %s1043_s6 = inlined_call_operand.vmem [shape: f32[32,128], index: 6, kind: input, shape index: {}]   ;;  %s1044_s7 = inlined_call_operand.vmem [shape: f32[1,128], index: 7, kind: input, shape index: {}]   ;;  %s1045_s8 = inlined_call_operand.hbm [shape: f32[8,128], index: 8, kind: output, shape index: {0}]   ;;  %s1046_s9 = inlined_call_operand.hbm [shape: f32[8,128], index: 9, kind: output, shape index: {1}]  }
   0x1   :  { %v162_v0 = vld [vmem:[%s1039_s2] sm:$0xff]  ;;  %681 = vset.pattern.permute.xlu0 %v738_v2 }
   0x2   :  { %v191_v1 = vld [vmem:[%s1040_s3] sm:$0xff]  ;;  %682 = vrcp.f32 %v162_v0 }
   0x3   :  { %684 = vrcp.f32 %v191_v1 }
   0x4   :  { %16 = vsyncpa [#allocation5], 0  ;;  %v354_v5 = vld [vmem:[%s1041_s4] sm:$0xff]  ;;  %v355_v6 = vld [vmem:[%s1041_s4 + $0x8] sm:$0xff]  ;;  %v739_v8 = vmov 0.0|0.0   ;;  %vm41_vm0 = vcmask 261120  }
   0x5   :  { %v356_v7 = vld [vmem:[%s1041_s4 + $0x10] sm:$0xff]  ;;  %642 = vmatprep.subr.bf16.mxu0 %v739_v8  ;;  %v643_v9 = vpack.c.bf16 %v355_v6, %v354_v5  ;;  %v357_v10 = vld [vmem:[%s1041_s4 + $0x18] sm:$0xff]  ;;  %666 = vmatprep.subr.bf16.mxu1 %v739_v8  ;;  %v358_v12 = vld [vmem:[%s1041_s4 + $0x20] sm:$0xff]  ;;  %vm253_vm1 = vcmask 1041409   ;;  %vm256_vm2 = vcmask 1042434   ;;  %vm259_vm3 = vcmask 1043459  }
   0x6   :  { %v646_v11 = vpack.c.bf16 %v357_v10, %v356_v7  ;;  %v359_v13 = vld [vmem:[%s1041_s4 + $0x28] sm:$0xff]  ;;  %v360_v15 = vld [vmem:[%s1041_s4 + $0x30] sm:$0xff]  ;;  %v361_v16 = vld [vmem:[%s1041_s4 + $0x38] sm:$0xff]  ;;  %vm262_vm4 = vcmask 1044484   ;;  %vm265_vm5 = vcmask 1045509   ;;  %vm268_vm6 = vcmask 1046534  }
   0x7   :  { %644 = vmatpush3.bf16.msra.mxu0 %v643_v9  ;;  %v649_v14 = vpack.c.bf16 %v359_v13, %v358_v12  ;;  %v652_v17 = vpack.c.bf16 %v361_v16, %v360_v15  ;;  %v362_v18 = vld [vmem:[%s1041_s4 + $0x40] sm:$0xff]  ;;  %v363_v19 = vld [vmem:[%s1041_s4 + $0x48] sm:$0xff]  ;;  %v364_v21 = vld [vmem:[%s1041_s4 + $0x50] sm:$0xff]  ;;  %vm271_vm7 = vcmask 1047559   ;;  %vm742_vm8 = vmmov 0   ;;  %s744_s11 = smov 64  }
   0x8   :  { %645 = vmatprep.subr.bf16.mxu0 %v739_v8  ;;  %v655_v20 = vpack.c.bf16 %v363_v19, %v362_v18  ;;  %v365_v22 = vld [vmem:[%s1041_s4 + $0x58] sm:$0xff]  ;;  %v366_v24 = vld [vmem:[%s1041_s4 + $0x60] sm:$0xff]  ;;  %v367_v25 = vld [vmem:[%s1041_s4 + $0x68] sm:$0xff]  ;;  %vm350_vm9 = vcmask 523264   ;;  %vm352_vm10 = vcmask 785408  }
   0x9   :  { %v658_v23 = vpack.c.bf16 %v365_v22, %v364_v21  ;;  %v661_v26 = vpack.c.bf16 %v367_v25, %v366_v24  ;;  %v33_v27 = vld [vmem:[%s1037_s0] sm:$0xff]  ;;  %v34_v28 = vld [vmem:[%s1037_s0 + $0x8] sm:$0xff]  ;;  %v35_v29 = vld [vmem:[%s1037_s0 + $0x10] sm:$0xff] }
   0xa   :  { %v42_v30 = vsel %vm41_vm0, %v33_v27, 0.0  ;;  %v49_v31 = vsel %vm41_vm0, %v34_v28, 0.0  ;;  %v56_v32 = vsel %vm41_vm0, %v35_v29, 0.0  ;;  %v98_v33 = vld [vmem:[%s1038_s1] sm:$0xff]  ;;  %v36_v34 = vld [vmem:[%s1037_s0 + $0x18] sm:$0xff]  ;;  %v99_v36 = vld [vmem:[%s1038_s1 + $0x8] sm:$0xff] }
   0xb   :  { %647 = vmatpush3.bf16.msra.mxu0 %v646_v11  ;;  %v37_v35 = vld [vmem:[%s1037_s0 + $0x20] sm:$0xff]  ;;  %v100_v37 = vld [vmem:[%s1038_s1 + $0x10] sm:$0xff]  ;;  %v101_v38 = vld [vmem:[%s1038_s1 + $0x18] sm:$0xff]  ;;  %v43_v39 = vrot.slane %v42_v30, 4  ;;  %v50_v43 = vrot.slane %v49_v31, 4  ;;  %v57_v44 = vrot.slane %v56_v32, 4 }
   0xc   :  { %v683_v3 = vpop.eup %682  ;;  %648 = vmatprep.subr.bf16.mxu0 %v739_v8  ;;  %v102_v40 = vld [vmem:[%s1038_s1 + $0x20] sm:$0xff]  ;;  %v103_v41 = vld [vmem:[%s1038_s1 + $0x28] sm:$0xff]  ;;  %v104_v42 = vld [vmem:[%s1038_s1 + $0x30] sm:$0xff]  ;;  %v106_v45 = vsel %vm41_vm0, %v98_v33, 0.0  ;;  %v113_v49 = vsel %vm41_vm0, %v99_v36, 0.0  ;;  %v120_v50 = vsel %vm41_vm0, %v100_v37, 0.0 }
   0xd   :  { %166 = vperm.xlu0 %681, %v683_v3   ;;  %v685_v4 = vpop.eup %684  ;;  %v38_v46 = vld [vmem:[%s1037_s0 + $0x28] sm:$0xff]  ;;  %v39_v47 = vld [vmem:[%s1037_s0 + $0x30] sm:$0xff]  ;;  %v40_v48 = vld [vmem:[%s1037_s0 + $0x38] sm:$0xff]  ;;  %v127_v51 = vsel %vm41_vm0, %v101_v38, 0.0  ;;  %v63_v52 = vsel %vm41_vm0, %v36_v34, 0.0  ;;  %v134_v54 = vsel %vm41_vm0, %v102_v40, 0.0  ;;  %v44_v11 = vadd.f32 %v43_v39, %v42_v30 }
   0xe   :  { %v105_v53 = vld [vmem:[%s1038_s1 + $0x38] sm:$0xff]  ;;  %v141_v55 = vsel %vm41_vm0, %v103_v41, 0.0  ;;  %v148_v56 = vsel %vm41_vm0, %v104_v42, 0.0  ;;  %v70_v57 = vsel %vm41_vm0, %v37_v35, 0.0  ;;  %v107_v58 = vrot.slane %v106_v45, 4  ;;  %s740_s0 = smov 32  }
   0xf   :  { %650 = vmatpush3.bf16.msra.mxu0 %v649_v14  ;;  %v77_v59 = vsel %vm41_vm0, %v38_v46, 0.0  ;;  %v84_v60 = vsel %vm41_vm0, %v39_v47, 0.0  ;;  %v91_v61 = vsel %vm41_vm0, %v40_v48, 0.0  ;;  %v114_v62 = vrot.slane %v113_v49, 4  ;;  %s741_s1 = smov 96  }
  0x10   :  { %651 = vmatprep.subr.bf16.mxu0 %v739_v8  ;;  %v121_v63 = vrot.slane %v120_v50, 4  ;;  %v128_v0 = vrot.slane %v127_v51, 4  ;;  %v64_v1 = vrot.slane %v63_v52, 4  ;;  %v135_v2 = vrot.slane %v134_v54, 4 }
  0x11   :  { %195 = vperm.xlu0 %681, %v685_v4   ;;  %v142_v3 = vrot.slane %v141_v55, 4  ;;  %v149_v4 = vrot.slane %v148_v56, 4  ;;  %v155_v5 = vsel %vm41_vm0, %v105_v53, 0.0  ;;  %v71_v6 = vrot.slane %v70_v57, 4 }
  0x12   :  { %v78_v7 = vrot.slane %v77_v59, 4  ;;  %v85_v9 = vrot.slane %v84_v60, 4  ;;  %v92_v10 = vrot.slane %v91_v61, 4  ;;  %v51_v12 = vadd.f32 %v50_v43, %v49_v31 }
  0x13   :  { %653 = vmatpush3.bf16.msra.mxu0 %v652_v17  ;;  %v58_v13 = vadd.f32 %v57_v44, %v56_v32  ;;  %v108_v14 = vadd.f32 %v107_v58, %v106_v45  ;;  %v115_v15 = vadd.f32 %v114_v62, %v113_v49  ;;  %v122_v16 = vadd.f32 %v121_v63, %v120_v50 }
  0x14   :  { %654 = vmatprep.subr.bf16.mxu0 %v739_v8  ;;  %v129_v17 = vadd.f32 %v128_v0, %v127_v51  ;;  %v156_v18 = vrot.slane %v155_v5, 4  ;;  %v136_v19 = vadd.f32 %v135_v2, %v134_v54  ;;  %v150_v21 = vadd.f32 %v149_v4, %v148_v56 }
  0x15   :  { %v65_v22 = vadd.f32 %v64_v1, %v63_v52  ;;  %v79_v24 = vadd.f32 %v78_v7, %v77_v59  ;;  %v86_v25 = vadd.f32 %v85_v9, %v84_v60  ;;  %v45_v27 = vrot.slane %v44_v11, 2 }
  0x16   :  { %v52_v28 = vrot.slane %v51_v12, 2  ;;  %v59_v29 = vrot.slane %v58_v13, 2  ;;  %v109_v33 = vrot.slane %v108_v14, 2  ;;  %v116_v30 = vrot.slane %v115_v15, 2 }
  0x17   :  { %656 = vmatpush3.bf16.msra.mxu0 %v655_v20  ;;  %v143_v20 = vadd.f32 %v142_v3, %v141_v55  ;;  %v123_v31 = vrot.slane %v122_v16, 2  ;;  %v130_v32 = vrot.slane %v129_v17, 2  ;;  %v157_v34 = vadd.f32 %v156_v18, %v155_v5 }
  0x18   :  { %657 = vmatprep.subr.bf16.mxu0 %v739_v8  ;;  %v137_v35 = vrot.slane %v136_v19, 2  ;;  %v151_v37 = vrot.slane %v150_v21, 2  ;;  %v66_v38 = vrot.slane %v65_v22, 2  ;;  %v80_v40 = vrot.slane %v79_v24, 2 }
  0x19   :  { %v144_v36 = vrot.slane %v143_v20, 2  ;;  %v87_v41 = vrot.slane %v86_v25, 2  ;;  %v46_v43 = vadd.f32 %v45_v27, %v44_v11  ;;  %v53_v44 = vadd.f32 %v52_v28, %v51_v12 }
  0x1a   :  { %v60_v45 = vadd.f32 %v59_v29, %v58_v13  ;;  %v110_v46 = vadd.f32 %v109_v33, %v108_v14  ;;  %v117_v47 = vadd.f32 %v116_v30, %v115_v15  ;;  %v124_v48 = vadd.f32 %v123_v31, %v122_v16 }
  0x1b   :  { %659 = vmatpush3.bf16.msra.mxu0 %v658_v23  ;;  %v72_v23 = vadd.f32 %v71_v6, %v70_v57  ;;  %v131_v49 = vadd.f32 %v130_v32, %v129_v17  ;;  %v158_v50 = vrot.slane %v157_v34, 2  ;;  %v138_v51 = vadd.f32 %v137_v35, %v136_v19 }
  0x1c   :  { %660 = vmatprep.subr.bf16.mxu0 %v739_v8  ;;  %v145_v52 = vadd.f32 %v144_v36, %v143_v20  ;;  %v152_v53 = vadd.f32 %v151_v37, %v150_v21  ;;  %v67_v54 = vadd.f32 %v66_v38, %v65_v22  ;;  %v81_v56 = vadd.f32 %v80_v40, %v79_v24 }
  0x1d   :  { %v73_v39 = vrot.slane %v72_v23, 2  ;;  %v88_v57 = vadd.f32 %v87_v41, %v86_v25  ;;  %v47_v59 = vrot.slane %v46_v43, 1  ;;  %v54_v60 = vrot.slane %v53_v44, 1 }
  0x1e   :  { %v111_v62 = vrot.slane %v110_v46, 1  ;;  %v118_v63 = vrot.slane %v117_v47, 1  ;;  %v125_v0 = vrot.slane %v124_v48, 1  ;;  %v132_v1 = vrot.slane %v131_v49, 1 }
  0x1f   :  { %662 = vmatpush3.bf16.msra.mxu0 %v661_v26  ;;  %v93_v26 = vadd.f32 %v92_v10, %v91_v61  ;;  %v74_v55 = vadd.f32 %v73_v39, %v72_v23  ;;  %v61_v61 = vrot.slane %v60_v45, 1  ;;  %v159_v2 = vadd.f32 %v158_v50, %v157_v34 }
  0x20   :  { %663 = vmatprep.subr.bf16.mxu0 %v739_v8  ;;  %v139_v3 = vrot.slane %v138_v51, 1  ;;  %v146_v4 = vrot.slane %v145_v52, 1  ;;  %v153_v5 = vrot.slane %v152_v53, 1  ;;  %v68_v6 = vrot.slane %v67_v54, 1 }
  0x21   :  { %v94_v42 = vrot.slane %v93_v26, 2  ;;  %v75_v7 = vrot.slane %v74_v55, 1  ;;  %v82_v9 = vrot.slane %v81_v56, 1  ;;  %v89_v10 = vrot.slane %v88_v57, 1 }
  0x22   :  { %v48_v12 = vadd.f32 %v47_v59, %v46_v43  ;;  %v55_v13 = vadd.f32 %v54_v60, %v53_v44  ;;  %v62_v14 = vadd.f32 %v61_v61, %v60_v45  ;;  %v112_v15 = vadd.f32 %v111_v62, %v110_v46 }
  0x23   :  { %v95_v58 = vadd.f32 %v94_v42, %v93_v26  ;;  %v119_v16 = vadd.f32 %v118_v63, %v117_v47  ;;  %v126_v17 = vadd.f32 %v125_v0, %v124_v48  ;;  %v133_v18 = vadd.f32 %v132_v1, %v131_v49 }
  0x24   :  { %v160_v19 = vrot.slane %v159_v2, 1  ;;  %v140_v20 = vadd.f32 %v139_v3, %v138_v51  ;;  %v147_v21 = vadd.f32 %v146_v4, %v145_v52  ;;  %v154_v22 = vadd.f32 %v153_v5, %v152_v53 }
  0x25   :  { %v96_v11 = vrot.slane %v95_v58, 1  ;;  %v69_v23 = vadd.f32 %v68_v6, %v67_v54  ;;  %v76_v25 = vadd.f32 %v75_v7, %v74_v55  ;;  %v83_v26 = vadd.f32 %v82_v9, %v81_v56 }
  0x26   :  { %v90_v27 = vadd.f32 %v89_v10, %v88_v57  ;;  %v161_v32 = vadd.f32 %v160_v19, %v159_v2 }
  0x27   :  { %v97_v28 = vadd.f32 %v96_v11, %v95_v58 }
  0x8c   :  { %v167_v24 = vpop.permute.xlu0 %166 }
  0x8d   :  { %v168_v29 = vrot.slane %v167_v24, 1  ;;  %v169_v33 = vrot.slane %v167_v24, 2  ;;  %v170_v30 = vrot.slane %v167_v24, 3  ;;  %v171_v31 = vrot.slane %v167_v24, 4 }
  0x8e   :  { %v172_v34 = vrot.slane %v167_v24, 5  ;;  %v173_v35 = vrot.slane %v167_v24, 6  ;;  %v174_v36 = vrot.slane %v167_v24, 7  ;;  %v918_v37 = vmul.f32 %v167_v24, %v48_v12 }
  0x8f   :  { %v920_v38 = vmul.f32 %v168_v29, %v55_v13  ;;  %v922_v39 = vmul.f32 %v169_v33, %v62_v14  ;;  %v924_v40 = vmul.f32 %v170_v30, %v69_v23  ;;  %v926_v42 = vmul.f32 %v171_v31, %v76_v25 }
  0x90   :  { %v196_v41 = vpop.permute.xlu0 %195  ;;  %v928_v43 = vmul.f32 %v172_v34, %v83_v26  ;;  %v930_v44 = vmul.f32 %v173_v35, %v90_v27  ;;  %v932_v45 = vmul.f32 %v174_v36, %v97_v28 }
  0x91   :  { %v197_v46 = vrot.slane %v196_v41, 1  ;;  %v198_v47 = vrot.slane %v196_v41, 2  ;;  %v199_v48 = vrot.slane %v196_v41, 3  ;;  %v200_v49 = vrot.slane %v196_v41, 4 }
  0x92   :  { %v201_v50 = vrot.slane %v196_v41, 5  ;;  %v202_v51 = vrot.slane %v196_v41, 6  ;;  %v203_v52 = vrot.slane %v196_v41, 7  ;;  %v212_v53 = vmul.f32 %v196_v41, %v112_v15 }
  0x93   :  { %v213_v54 = vmul.f32 %v197_v46, %v119_v16  ;;  %v214_v55 = vmul.f32 %v198_v47, %v126_v17  ;;  %v215_v56 = vmul.f32 %v199_v48, %v133_v18  ;;  %v216_v57 = vmul.f32 %v200_v49, %v140_v20 }
  0x94   :  { %v217_v58 = vmul.f32 %v201_v50, %v147_v21  ;;  %v218_v59 = vmul.f32 %v202_v51, %v154_v22  ;;  %v219_v60 = vmul.f32 %v203_v52, %v161_v32  ;;  %v236_v61 = vmul.f32 %v212_v53, %v918_v37 }
  0x95   :  { %v282_v62 = vrot.slane %v213_v54, 7  ;;  %v284_v63 = vrot.slane %v214_v55, 6  ;;  %v286_v0 = vrot.slane %v215_v56, 5  ;;  %v288_v1 = vrot.slane %v216_v57, 4 }
  0x96   :  { %v290_v2 = vrot.slane %v217_v58, 3  ;;  %v292_v3 = vrot.slane %v218_v59, 2  ;;  %v294_v4 = vrot.slane %v219_v60, 1  ;;  %v237_v5 = vmul.f32 %v213_v54, %v920_v38 }
  0x97   :  { %v283_v6 = vsel %vm253_vm1, %v282_v62, %v212_v53  ;;  %v238_v7 = vmul.f32 %v214_v55, %v922_v39  ;;  %v239_v9 = vmul.f32 %v215_v56, %v924_v40  ;;  %v240_v10 = vmul.f32 %v216_v57, %v926_v42 }
  0x98   :  { %v285_v11 = vsel %vm256_vm2, %v284_v63, %v283_v6  ;;  %v241_v12 = vmul.f32 %v217_v58, %v928_v43  ;;  %v242_v13 = vmul.f32 %v218_v59, %v930_v44  ;;  %v243_v14 = vmul.f32 %v219_v60, %v932_v45 }
  0x99   :  { %v287_v15 = vsel %vm259_vm3, %v286_v0, %v285_v11  ;;  %v332_v16 = vrot.slane %v237_v5, 7  ;;  %v334_v17 = vrot.slane %v238_v7, 6  ;;  %v336_v18 = vrot.slane %v239_v9, 5  ;;  %v368_v0 = vld [vmem:[%s1041_s4 + $0x70] sm:$0xff] }
  0x9a   :  { %v289_v19 = vsel %vm262_vm4, %v288_v1, %v287_v15  ;;  %v338_v20 = vrot.slane %v240_v10, 4  ;;  %v340_v21 = vrot.slane %v241_v12, 3  ;;  %v342_v22 = vrot.slane %v242_v13, 2  ;;  %v369_v1 = vld [vmem:[%s1041_s4 + $0x78] sm:$0xff] }
  0x9b   :  { %v291_v23 = vsel %vm265_vm5, %v290_v2, %v289_v19  ;;  %v333_v24 = vsel %vm253_vm1, %v332_v16, %v236_v61  ;;  %v344_v25 = vrot.slane %v243_v14, 1  ;;  %v220_v26 = vsub.f32 %v918_v37, %v212_v53  ;;  %v448_v14 = vld [vmem:[%s1043_s6] sm:$0xff] }
  0x9c   :  { %v293_v27 = vsel %vm268_vm6, %v292_v3, %v291_v23  ;;  %v335_v28 = vsel %vm256_vm2, %v334_v17, %v333_v24  ;;  %v221_v29 = vsub.f32 %v920_v38, %v213_v54  ;;  %v222_v33 = vsub.f32 %v922_v39, %v214_v55 }
  0x9d   :  { %v295_v30 = vsel %vm271_vm7, %v294_v4, %v293_v27  ;;  %v337_v31 = vsel %vm259_vm3, %v336_v18, %v335_v28  ;;  %v223_v32 = vsub.f32 %v924_v40, %v215_v56  ;;  %v224_v34 = vsub.f32 %v926_v42, %v216_v57  ;;  %v450_v28 = vld [vmem:[%s1043_s6 + $0x10] sm:$0xff] }
  0x9e   :  { %296 = vrot.lane.b32.xlu1 %v295_v30, %s740_s0  ;;  %v339_v35 = vsel %vm262_vm4, %v338_v20, %v337_v31  ;;  %v225_v36 = vsub.f32 %v928_v43, %v217_v58  ;;  %v226_v41 = vsub.f32 %v930_v44, %v218_v59  ;;  %v227_v46 = vsub.f32 %v932_v45, %v219_v60 }
  0x9f   :  { %v341_v47 = vsel %vm265_vm5, %v340_v21, %v339_v35  ;;  %v228_v48 = vand.u32 2147483647, %v220_v26  ;;  %v229_v49 = vand.u32 2147483647, %v221_v29  ;;  %v230_v50 = vand.u32 2147483647, %v222_v33 }
  0xa0   :  { %v343_v51 = vsel %vm268_vm6, %v342_v22, %v341_v47  ;;  %v231_v52 = vand.u32 2147483647, %v223_v32  ;;  %v232_v53 = vand.u32 2147483647, %v224_v34  ;;  %v233_v54 = vand.u32 2147483647, %v225_v36 }
  0xa1   :  { %v345_v55 = vsel %vm271_vm7, %v344_v25, %v343_v51  ;;  %v234_v56 = vand.u32 2147483647, %v226_v41  ;;  %v235_v57 = vand.u32 2147483647, %v227_v46  ;;  %v307_v61 = vrot.slane %v229_v49, 7  ;;  %v451_v29 = vld [vmem:[%s1043_s6 + $0x18] sm:$0xff] }
  0xa2   :  { %346 = vrot.lane.b32.xlu0 %v345_v55, %s741_s1  ;;  %v309_v58 = vrot.slane %v230_v50, 6  ;;  %v311_v60 = vrot.slane %v231_v52, 5  ;;  %v313_v62 = vrot.slane %v232_v53, 4  ;;  %v252_v63 = vrot.slane %v920_v38, 7  ;;  %v572_v35 = vld [vmem:[%s1044_s7] ss:$0 sm:$0xff] }
  0xa3   :  { %v308_v59 = vsel %vm253_vm1, %v307_v61, %v228_v48  ;;  %v315_v3 = vrot.slane %v233_v54, 3  ;;  %v317_v4 = vrot.slane %v234_v56, 2  ;;  %v255_v5 = vrot.slane %v922_v39, 6  ;;  %v449_v39 = vld [vmem:[%s1043_s6 + $0x8] sm:$0xff] }
  0xa4   :  { %v310_v2 = vsel %vm256_vm2, %v309_v58, %v308_v59  ;;  %v319_v7 = vrot.slane %v235_v57, 1  ;;  %v254_v38 = vsel %vm253_vm1, %v252_v63, %v918_v37  ;;  %v258_v9 = vrot.slane %v924_v40, 5 }
  0xa5   :  { %v312_v6 = vsel %vm259_vm3, %v311_v60, %v310_v2  ;;  %v257_v11 = vsel %vm256_vm2, %v255_v5, %v254_v38  ;;  %v261_v12 = vrot.slane %v926_v42, 4  ;;  %v664_v13 = vpack.c.bf16 %v369_v1, %v368_v0 }
  0xa6   :  { %v314_v10 = vsel %vm262_vm4, %v313_v62, %v312_v6  ;;  %v260_v37 = vsel %vm259_vm3, %v258_v9, %v257_v11  ;;  %v264_v40 = vrot.slane %v928_v43, 3  ;;  %v267_v42 = vrot.slane %v930_v44, 2 }
  0xa7   :  { %v316_v15 = vsel %vm265_vm5, %v315_v3, %v314_v10  ;;  %v263_v17 = vsel %vm262_vm4, %v261_v12, %v260_v37  ;;  %665 = vmatpush3.bf16.msra.mxu0 %v664_v13  ;;  %v270_v20 = vrot.slane %v932_v45, 1  ;;  %v743_v21 = vmov 0.0  }
  0xa8   :  { %v318_v16 = vsel %vm268_vm6, %v317_v4, %v316_v15  ;;  %v266_v19 = vsel %vm265_vm5, %v264_v40, %v263_v17  ;;  %628 = vmatprep.mubr.msk.f32.mxu0 %vm742_vm8, %v743_v21  ;;  %v667_v22 = vpack.c.bf16 %v449_v39, %v448_v14  ;;  %639 = vmatprep.mubr.msk.f32.mxu1 %vm742_vm8, %v743_v21 }
  0xa9   :  { %v320_v18 = vsel %vm271_vm7, %v319_v7, %v318_v16  ;;  %v269_v43 = vsel %vm268_vm6, %v267_v42, %v266_v19  ;;  %v670_v33 = vpack.c.bf16 %v451_v29, %v450_v28 }
  0xaa   :  { %321 = vrot.lane.b32.xlu1 %v320_v18, %s744_s11  ;;  %v272_v23 = vsel %vm271_vm7, %v270_v20, %v269_v43  ;;  %668 = vmatpush3.bf16.msra.mxu1 %v667_v22 }
  0xab   :  { %669 = vmatprep.subr.bf16.mxu1 %v739_v8  ;;  %v571_v8 = vld [vmem:[%s1042_s5] ss:$0 sm:$0xff]  ;;  %s745_s5 = smov [#allocation2]  }
  0xac   :  { %s549_s6 = sshll.u32 %s745_s5, 4  ;;  %s550_s6 = int_to_ptr.vmem [resolvable:$true] %s549_s6 }
  0xad   :  { %s690_s18 = scalar_lea.vmem %s550_s6, 128  ;;  %p695_p1 = scmp.lt.s32.totalorder %s550_s6, %s550_s6 }
  0xae   :  { %671 = vmatpush3.bf16.msra.mxu1 %v670_v33  ;;  %p691_p0 = scmp.ne.s32.totalorder %s550_s6, %s690_s18  ;;  %p696_p2 = scmp.lt.s32.totalorder %s690_s18, %s690_s18 }
  0xb0   :  { %p697_p3 = por %p696_p2, %p695_p1 }
  0xb2   :  { %p698_p4 = pnand %p697_p3, %p691_p0 }
 0x110   :  { %v297_v44 = vpop.permute.xlu1 %296 }
 0x111   :  { %v349_v24 = vsel %vm41_vm0, %v272_v23, %v297_v44 }
 0x114   :  { %v347_v25 = vpop.permute.xlu0 %346 }
 0x11c   :  { %v322_v45 = vpop.permute.xlu1 %321 }
 0x11d   :  { %v351_v26 = vsel %vm350_vm9, %v349_v24, %v322_v45 }
 0x11e   :  { %v353_v27 = vsel %vm352_vm10, %v351_v26, %v347_v25 }
 0x11f   :  { %629 = vmatmul.mubr.f32.vlgmr.msra.gmra.mrb[0].mxu0 %v353_v27 }
 0x1f2   :  { %v443_v30 = vpop.f32.mrb[0].mxu0 }
 0x1f3   :  { %v444_v31 = vadd.f32 %v571_v8, %v443_v30  ;;  %v630_v32 = vpop.f32.mrb[1].mxu0 }
 0x1f5   :  { %v447_v34 = vmax.f32 %v444_v31, 0.0 }
 0x1f7   :  { %640 = vmatmul.mubr.msk.f32.vlgmr.msra.gmra.mrb[0].mxu1 %vm41_vm0, %v447_v34 }
 0x2ca   :  { %v528_v36 = vpop.f32.mrb[0].mxu1 }
 0x2cb   :  { %v529_v41 = vadd.f32 %v572_v35, %v528_v36  ;;  %v641_v46 = vpop.f32.mrb[1].mxu1 }
 0x2cd   :  { %532 = vst [vmem:[#allocation2] sm:$0xff] %v529_v41  ;;  %533 = vmax.xlane.f32.xlu1 %v529_v41 }
 0x35a   :  { %v534_v47 = vpop.xlane.xlu1 %533 }
 0x35b   :  { %v535_v48 = vsub.f32 %v529_v41, %v534_v47 }
 0x35d   :  { %v536_v49 = vmul.f32 1.442695, %v535_v48 }
 0x35f   :  { %686 = vpow2.f32 %v536_v49 }
 0x369   :  { %v687_v50 = vpop.eup %686 }
 0x36a   :  { %538 = vadd.xlane.f32.xlu0 %v687_v50 }
 0x36b   :  { %701 = shalt.err (!%p698_p4)
}
 0x36c   :  { %s702_s20 = scalar_lea.hbm %s1045_s8, 128 }
 0x36d   :  { %p703_p5 = scmp.ne.s32.totalorder %s1045_s8, %s702_s20  ;;  %p706_p6 = scmp.lt.u32.totalorder %s702_s20, %s1045_s8 }
 0x36f   :  { %p708_p7 = pnand %p706_p6, %p703_p5 }
 0x371   :  { %711 = shalt.err (!%p708_p7)
}
 0x372   :  { %552 = dma.vmem_to_hbm [thread:$0]  %s550_s6, 128, %s1045_s8, [#allocation3]  }
 0x373   :  { %s746_s25 = smov [#allocation4]  }
 0x374   :  { %s559_s26 = sshll.u32 %s746_s25, 4  ;;  %s560_s26 = int_to_ptr.vmem [resolvable:$true] %s559_s26 }
 0x375   :  { %s712_s27 = scalar_lea.vmem %s560_s26, 128  ;;  %p717_p9 = scmp.lt.s32.totalorder %s560_s26, %s560_s26 }
 0x376   :  { %p713_p8 = scmp.ne.s32.totalorder %s560_s26, %s712_s27  ;;  %p718_p10 = scmp.lt.s32.totalorder %s712_s27, %s712_s27 }
 0x378   :  { %p719_p11 = por %p718_p10, %p717_p9 }
 0x37a   :  { %p720_p12 = pnand %p719_p11, %p713_p8 }
 0x3f7   :  { %v539_v51 = vpop.xlane.xlu0 %538 }
 0x3f8   :  { %688 = vrcp.f32 %v539_v51 }
 0x402   :  { %v689_v52 = vpop.eup %688 }
 0x403   :  { %v541_v53 = vmul.f32 %v689_v52, %v687_v50 }
 0x405   :  { %542 = vst [vmem:[#allocation4] sm:$0xff] %v541_v53 }
 0x406   :  { %723 = shalt.err (!%p720_p12)
}
 0x407   :  { %s724_s29 = scalar_lea.hbm %s1046_s9, 128 }
 0x408   :  { %p725_p13 = scmp.ne.s32.totalorder %s1046_s9, %s724_s29  ;;  %p728_p0 = scmp.lt.u32.totalorder %s724_s29, %s1046_s9 }
 0x40a   :  { %p730_p1 = pnand %p728_p0, %p725_p13 }
 0x40c   :  { %733 = shalt.err (!%p730_p1)
}
 0x40d   :  { %562 = dma.vmem_to_hbm [thread:$0]  %s560_s26, 128, %s1046_s9, [#allocation5]  }
 0x40e   :  { %734 = dma.done.wait [#allocation3], 128  }
 0x40f   :  { %735 = vsyncadd [#allocation3], 4294967168 }
 0x410   :  { %736 = dma.done.wait [#allocation5], 128  }
 0x411   :  { %737 = vsyncadd [#allocation5], 4294967168 }
 0x412   :  { %569 = vsyncpa [#allocation3], 1 }
 0x413   :  { %570 = vsyncpa [#allocation5], 1 }

</bundles_post_ra>
